<compile_context>
chip_gen: v6e
topology: v6e:2x2x1
jax: 0.10.0
libtpu: 0.0.40
codegen_flags: <defaults>
</compile_context>

<pallas_src>
import math

import jax
import jax.numpy as jnp
from jax.experimental import pallas as pl
from jax.experimental.pallas import tpu as pltpu

_LANES = 128
_TARGET_BLOCK_BYTES = 2 * 1024 * 1024  # ~2 MiB payload per grid step


def _mc_dropout_keep_all_kernel(x_ref, o_ref):
    # keep_prob == 1.0 (bernoulli of an all-ones tensor): mask is all-ones,
    # so output == input elementwise.  Straight tile copy.
    o_ref[...] = x_ref[...]


def _sublane_multiple(dtype) -> int:
    itemsize = jnp.dtype(dtype).itemsize
    return {4: 8, 2: 16, 1: 32}.get(itemsize, 8)


def _pick_lane_width(total: int, last_dim: int) -> int:
    """Widest lane-dense last dim (multiple of 128) dividing `total`, else last_dim."""
    for lanes in (2048, 1024, 512, 256, 128):
        if total % lanes == 0:
            return lanes
    return last_dim  # non-lane-dense fallback: full-extent last dim is always legal


def monte_carlo_dropout(x, *, dropout_rate, use_mc_dropout, filterwise_dropout,
                        training=False):
    """x: (N, H, W, C) NHWC (channel axis is inputs.shape[3] in the reference).

    Returns an array with the same shape/dtype as x.
    """
    # torch.bernoulli(torch.ones(...)) keeps every element with probability 1.0
    # for both the filterwise ([N,1,1,C]) and full-shape noise, so neither
    # dropout_rate nor filterwise_dropout affects the forward numerics.
    del dropout_rate, filterwise_dropout

    if not (use_mc_dropout or training):
        return x  # eval path: identity pass-through

    orig_shape = x.shape
    total = math.prod(orig_shape)
    itemsize = jnp.dtype(x.dtype).itemsize

    lanes = _pick_lane_width(total, orig_shape[-1])
    x2 = x.reshape(total // lanes, lanes)
    rows = x2.shape[0]

    # Row tiling: aim for ~2 MiB per block, sublane-aligned.  If the array is
    # small (or rows don't reach a full sublane multiple), use the full extent
    # of the row axis — a full-extent block dim is always legal.
    sub = _sublane_multiple(x.dtype)
    target_rows = max(sub, _TARGET_BLOCK_BYTES // max(1, lanes * itemsize))
    if rows <= max(sub, target_rows):
        tile_rows = rows
    else:
        tile_rows = max(sub, (min(rows, target_rows) // sub) * sub)
    grid = (pl.cdiv(rows, tile_rows),)

    block_bytes = tile_rows * lanes * itemsize
    # in + out, double-buffered (4x block), plus headroom; stays well below the
    # 16/32/32 MiB scoped-VMEM defaults on v5e/v6e/v7x.
    vmem_limit = min(max(8 * block_bytes, 4 * 1024 * 1024), 24 * 1024 * 1024)

    out = pl.pallas_call(
        _mc_dropout_keep_all_kernel,
        out_shape=jax.ShapeDtypeStruct(x2.shape, x.dtype),
        grid=grid,
        in_specs=[pl.BlockSpec((tile_rows, lanes), lambda i: (i, 0))],
        out_specs=pl.BlockSpec((tile_rows, lanes), lambda i: (i, 0)),
        compiler_params=pltpu.CompilerParams(
            # No cross-step state (no PRNG carry) -> let Mosaic shard the grid
            # across both TensorCores on v7x; neutral on v5e/v6e.
            dimension_semantics=("parallel",),
            vmem_limit_bytes=int(vmem_limit),
        ),
    )(x2)

    return out.reshape(orig_shape)


if __name__ == "__main__":
    key = jax.random.PRNGKey(0)

    # Small NHWC input: batch=2, spatial=16x16, channels=32
    # (lane-dense path: 2*16*16*32 = 16384 elements).
    x = jax.random.normal(key, (2, 16, 16, 32), dtype=jnp.float32)

    # Module config: dropout_rate=0.1, use_mc_dropout=True, filterwise_dropout=True
    y_filterwise = monte_carlo_dropout(
        x, dropout_rate=0.1, use_mc_dropout=True, filterwise_dropout=True)
    y_filterwise = jax.block_until_ready(y_filterwise)

    # Non-filterwise (full-shape mask) path — same numerics (mask is all-ones).
    y_full = monte_carlo_dropout(
        x, dropout_rate=0.1, use_mc_dropout=True, filterwise_dropout=False)
    y_full = jax.block_until_ready(y_full)

    assert y_filterwise.shape == x.shape and y_filterwise.dtype == x.dtype
    assert jnp.array_equal(y_filterwise, x)
    assert jnp.array_equal(y_full, x)

    # Odd shape exercising the non-lane-dense fallback path (total % 128 != 0).
    x_odd = jax.random.normal(jax.random.PRNGKey(1), (2, 5, 7, 3), jnp.float32)
    y_odd = jax.block_until_ready(monte_carlo_dropout(
        x_odd, dropout_rate=0.1, use_mc_dropout=True, filterwise_dropout=True))
    assert y_odd.shape == x_odd.shape
    assert jnp.array_equal(y_odd, x_odd)

    # bf16 path (different sublane multiple) on a larger slab.
    x_bf16 = jax.random.normal(jax.random.PRNGKey(2), (2, 32, 32, 64),
                               dtype=jnp.bfloat16)
    y_bf16 = jax.block_until_ready(monte_carlo_dropout(
        x_bf16, dropout_rate=0.1, use_mc_dropout=True, filterwise_dropout=True))
    assert jnp.array_equal(y_bf16, x_bf16)

    # Eval path (use_mc_dropout=False, training=False) is identity pass-through.
    y_eval = monte_carlo_dropout(
        x, dropout_rate=0.1, use_mc_dropout=False, filterwise_dropout=True)
    assert jnp.array_equal(jax.block_until_ready(y_eval), x)

    print("KERNEL_OK")
</pallas_src>

<mosaic_0001>
module attributes {stable_mosaic.version = 11 : i64} {
  func.func @_mc_dropout_keep_all_kernel(%arg0: i32, %arg1: memref<8x2048xf32, #tpu.memory_space<vmem>>, %arg2: memref<8x2048xf32, #tpu.memory_space<vmem>>) attributes {dimension_semantics = [#tpu.dimension_semantics<parallel>], iteration_bounds = array<i64: 1>, scalar_prefetch = 0 : i64, scratch_operands = 0 : i64, tpu.core_type = #tpu.core_type<tc>, window_params = [{transform_indices = @transform_0, window_bounds = array<i64: 8, 2048>}, {transform_indices = @transform_1, window_bounds = array<i64: 8, 2048>}]} {
    %c0 = arith.constant 0 : index
    %c0_0 = arith.constant 0 : index
    %0 = vector.load %arg1[%c0, %c0_0] : memref<8x2048xf32, #tpu.memory_space<vmem>>, vector<8x2048xf32>
    %c0_1 = arith.constant 0 : index
    %c0_2 = arith.constant 0 : index
    %1 = vector.load %arg2[%c0_1, %c0_2] : memref<8x2048xf32, #tpu.memory_space<vmem>>, vector<8x2048xf32>
    tpu.vector_store %arg2[%c0_1, %c0_2], %0 {strides = array<i32>} : memref<8x2048xf32, #tpu.memory_space<vmem>>, vector<8x2048xf32>,
    return
  }
  func.func @transform_0(%arg0: i32) -> (i32, i32) {
    %c0_i32 = arith.constant 0 : i32
    %c0_i32_0 = arith.constant 0 : i32
    return %arg0, %c0_i32 : i32, i32
  }
  func.func @transform_1(%arg0: i32) -> (i32, i32) {
    %c0_i32 = arith.constant 0 : i32
    %c0_i32_0 = arith.constant 0 : i32
    return %arg0, %c0_i32 : i32, i32
  }
}

</mosaic_0001>

<bundles_post_ra>
// kernel: tpu_custom_call.1
= control target key start
LH: loop header
LB: loop body
LE: loop exit
PB: predicated region body
PF: predicated region fallthrough
CT: control target
= control target key end

     0   :  { %6 = vsyncpa [#allocation3], 0  ;;  %s132_s0 = inlined_call_operand.hbm [shape: f32[8,2048], index: 0, kind: input, shape index: {}]   ;;  %s133_s1 = inlined_call_operand.hbm [shape: f32[8,2048], index: 1, kind: output, shape index: {}]  }
   0x1   :  { %7 = vsyncpa [#allocation4], 0  ;;  %s114_s6 = smov [#allocation2]  }
   0x2   :  { %s14_s7 = sshll.u32 %s114_s6, 4  ;;  %s15_s7 = int_to_ptr.vmem [resolvable:$true] %s14_s7 }
   0x3   :  { %s78_s8 = scalar_lea.vmem %s15_s7, 2048  ;;  %p83_p1 = scmp.lt.s32.totalorder %s15_s7, %s15_s7 }
   0x4   :  { %p79_p0 = scmp.ne.s32.totalorder %s15_s7, %s78_s8  ;;  %p84_p2 = scmp.lt.s32.totalorder %s78_s8, %s78_s8 }
   0x6   :  { %p85_p3 = por %p84_p2, %p83_p1 }
   0x8   :  { %p86_p4 = pnand %p85_p3, %p79_p0 }
   0xa   :  { %89 = shalt.err (!%p86_p4)
}
   0xb   :  { %17 = dma.hbm_to_vmem [thread:$0]  %s132_s0, 2048, %s15_s7, [#allocation3]  }
   0xc   :  { %110 = dma.done.wait [#allocation3], 2048  }
   0xd   :  { %111 = vsyncadd [#allocation3], 4294965248  ;;  %v21_v0 = vld [vmem:[#allocation2] sm:$0xff]  ;;  %v22_v1 = vld [vmem:[#allocation2 + $0x8] sm:$0xff]  ;;  %s115_s11 = smov [#allocation5]  }
   0xe   :  { %v23_v2 = vld [vmem:[#allocation2 + $0x10] sm:$0xff]  ;;  %37 = vst [vmem:[#allocation5] sm:$0xff] %v21_v0  ;;  %38 = vst [vmem:[#allocation5 + $0x8] sm:$0xff] %v22_v1  ;;  %v24_v3 = vld [vmem:[#allocation2 + $0x18] sm:$0xff]  ;;  %s59_s12 = sshll.u32 %s115_s11, 4  ;;  %s60_s12 = int_to_ptr.vmem [resolvable:$true] %s59_s12 }
   0xf   :  { %39 = vst [vmem:[#allocation5 + $0x10] sm:$0xff] %v23_v2  ;;  %v25_v4 = vld [vmem:[#allocation2 + $0x20] sm:$0xff]  ;;  %v26_v5 = vld [vmem:[#allocation2 + $0x28] sm:$0xff]  ;;  %40 = vst [vmem:[#allocation5 + $0x18] sm:$0xff] %v24_v3  ;;  %s90_s0 = scalar_lea.vmem %s60_s12, 2048  ;;  %p95_p6 = scmp.lt.s32.totalorder %s60_s12, %s60_s12 }
  0x10   :  { %41 = vst [vmem:[#allocation5 + $0x20] sm:$0xff] %v25_v4  ;;  %42 = vst [vmem:[#allocation5 + $0x28] sm:$0xff] %v26_v5  ;;  %v27_v6 = vld [vmem:[#allocation2 + $0x30] sm:$0xff]  ;;  %v28_v7 = vld [vmem:[#allocation2 + $0x38] sm:$0xff]  ;;  %p91_p5 = scmp.ne.s32.totalorder %s60_s12, %s90_s0  ;;  %p96_p7 = scmp.lt.s32.totalorder %s90_s0, %s90_s0 }
  0x11   :  { %v29_v8 = vld [vmem:[#allocation2 + $0x40] sm:$0xff]  ;;  %43 = vst [vmem:[#allocation5 + $0x30] sm:$0xff] %v27_v6  ;;  %44 = vst [vmem:[#allocation5 + $0x38] sm:$0xff] %v28_v7  ;;  %v30_v9 = vld [vmem:[#allocation2 + $0x48] sm:$0xff] }
  0x12   :  { %45 = vst [vmem:[#allocation5 + $0x40] sm:$0xff] %v29_v8  ;;  %v31_v10 = vld [vmem:[#allocation2 + $0x50] sm:$0xff]  ;;  %v32_v11 = vld [vmem:[#allocation2 + $0x58] sm:$0xff]  ;;  %46 = vst [vmem:[#allocation5 + $0x48] sm:$0xff] %v30_v9  ;;  %p97_p8 = por %p96_p7, %p95_p6 }
  0x13   :  { %47 = vst [vmem:[#allocation5 + $0x50] sm:$0xff] %v31_v10  ;;  %48 = vst [vmem:[#allocation5 + $0x58] sm:$0xff] %v32_v11  ;;  %v33_v12 = vld [vmem:[#allocation2 + $0x60] sm:$0xff]  ;;  %v34_v13 = vld [vmem:[#allocation2 + $0x68] sm:$0xff] }
  0x14   :  { %v35_v14 = vld [vmem:[#allocation2 + $0x70] sm:$0xff]  ;;  %49 = vst [vmem:[#allocation5 + $0x60] sm:$0xff] %v33_v12  ;;  %50 = vst [vmem:[#allocation5 + $0x68] sm:$0xff] %v34_v13  ;;  %v36_v15 = vld [vmem:[#allocation2 + $0x78] sm:$0xff]  ;;  %p98_p9 = pnand %p97_p8, %p91_p5 }
  0x15   :  { %51 = vst [vmem:[#allocation5 + $0x70] sm:$0xff] %v35_v14  ;;  %52 = vst [vmem:[#allocation5 + $0x78] sm:$0xff] %v36_v15 }
  0x16   :  { %101 = shalt.err (!%p98_p9)
}
  0x17   :  { %62 = dma.vmem_to_hbm [thread:$0]  %s60_s12, 2048, %s133_s1, [#allocation4]  }
  0x18   :  { %112 = dma.done.wait [#allocation4], 2048  }
  0x19   :  { %113 = vsyncadd [#allocation4], 4294965248 }
  0x1a   :  { %66 = vsyncpa [#allocation3], 1 }
  0x1b   :  { %67 = vsyncpa [#allocation4], 1 }

</bundles_post_ra>
